<compile_context>
chip_gen: v7x
topology: tpu7x:2x2x1
jax: 0.10.0
libtpu: 0.0.40
codegen_flags: <defaults>
</compile_context>

<pallas_src>
import jax
import jax.numpy as jnp
from jax.experimental import pallas as pl
from jax.experimental.pallas import tpu as pltpu


_LANES = 1024           # lane-dense last dim (multiple of 128)
_MAX_BLOCK_ROWS = 256   # 256 * 1024 * 4 B = 1 MiB per input block
_NCORES = 2             # "parallel" grid split: both TCs on v7x, harmless on v5e/v6e


def _round_up(x, m):
    return ((x + m - 1) // m) * m


def _geometry(n_elems):
    """Pick a lane/sublane-dense slab layout and block size for n_elems."""
    rows = _round_up(max(1, pl.cdiv(n_elems, _LANES)), 8)
    per_core = _round_up(pl.cdiv(rows, _NCORES), 8)
    block_rows = min(_MAX_BLOCK_ROWS, per_core)
    rows = _round_up(rows, _NCORES * block_rows)
    blocks_per_core = rows // (_NCORES * block_rows)
    return rows, block_rows, blocks_per_core


def _to_slab(x, rows):
    """Flatten, cast to f32, zero-pad (harmless for sum of squares), reshape."""
    flat = jnp.ravel(x).astype(jnp.float32)
    flat = jnp.pad(flat, (0, rows * _LANES - flat.size))
    return flat.reshape(rows, _LANES)


def _sumsq_pair_kernel(fg_ref, bg_ref, o_ref, fg_acc, bg_acc):
    step = pl.program_id(1)

    @pl.when(step == 0)
    def _():
        fg_acc[...] = jnp.zeros_like(fg_acc)
        bg_acc[...] = jnp.zeros_like(bg_acc)

    # Pure-VPU elementwise accumulate into block-shaped VMEM scratch.
    fg = fg_ref[...]
    bg = bg_ref[...]
    fg_acc[...] += fg * fg
    bg_acc[...] += bg * bg

    # Single cross-lane/sublane reduction per core, only at the final step.
    @pl.when(step == pl.num_programs(1) - 1)
    def _():
        fg_e = jnp.sum(fg_acc[...])
        bg_e = jnp.sum(bg_acc[...])
        row = jax.lax.broadcasted_iota(jnp.int32, (1, 8, 128), 1)
        lane = jax.lax.broadcasted_iota(jnp.int32, (1, 8, 128), 2)
        first_row = row == 0
        o_ref[...] = jnp.where(
            first_row & (lane == 0), fg_e,
            jnp.where(first_row & (lane == 1), bg_e, 0.0),
        )


@jax.jit
def sum_of_squares_pair(foreground_wav, background_wav):
    """Fused sum-of-squares of two waveforms -> (2,) f32 [fg_energy, bg_energy]."""
    n = max(foreground_wav.size, background_wav.size)
    rows, block_rows, blocks_per_core = _geometry(n)
    fg = _to_slab(foreground_wav, rows)
    bg = _to_slab(background_wav, rows)

    in_idx = lambda p, i: (p * blocks_per_core + i, 0)

    out = pl.pallas_call(
        _sumsq_pair_kernel,
        out_shape=jax.ShapeDtypeStruct((_NCORES, 8, 128), jnp.float32),
        grid_spec=pltpu.PrefetchScalarGridSpec(
            num_scalar_prefetch=0,
            grid=(_NCORES, blocks_per_core),
            in_specs=[
                pl.BlockSpec((block_rows, _LANES), in_idx),
                pl.BlockSpec((block_rows, _LANES), in_idx),
            ],
            out_specs=pl.BlockSpec((1, 8, 128), lambda p, i: (p, 0, 0)),
            scratch_shapes=[
                pltpu.VMEM((block_rows, _LANES), jnp.float32),
                pltpu.VMEM((block_rows, _LANES), jnp.float32),
            ],
        ),
        compiler_params=pltpu.CompilerParams(
            dimension_semantics=("parallel", "arbitrary"),
        ),
    )(fg, bg)

    # Combine per-core partials: lane 0 holds fg energy, lane 1 holds bg energy.
    return jnp.sum(out, axis=(0, 1))[:2]


def filter_none_speech(foreground_wav, background_wav):
    """Exact semantics of FilterNoneSpeech.forward (host-side None/tuple logic)."""
    energies = sum_of_squares_pair(foreground_wav, background_wav)
    fg_e, bg_e = (float(v) for v in jax.device_get(energies))  # single host sync

    if fg_e == 0.0:
        foreground_wav = None
    if bg_e == 0.0:
        # PyTorch module sets background_wav = None and falls off the end
        # -> implicit None return.
        return None
    else:
        return (foreground_wav, background_wav)


if __name__ == "__main__":
    key = jax.random.PRNGKey(0)
    k1, k2 = jax.random.split(key)

    C, S = 8, 2048  # small audio-like shape
    fg = jax.random.normal(k1, (C, S), dtype=jnp.float32)
    bg = jax.random.normal(k2, (C, S), dtype=jnp.float32)

    # Numerical check of the fused reduction against a pure-JAX reference.
    energies = jax.block_until_ready(sum_of_squares_pair(fg, bg))
    ref = jnp.array([jnp.sum(fg * fg), jnp.sum(bg * bg)])
    assert jnp.allclose(energies, ref, rtol=1e-4, atol=1e-3), (energies, ref)

    # Case 1: both non-zero -> tuple returned.
    out = filter_none_speech(fg, bg)
    assert isinstance(out, tuple) and out[0] is not None and out[1] is not None

    # Case 2: zero foreground -> (None, bg).
    out2 = filter_none_speech(jnp.zeros((C, S), jnp.float32), bg)
    assert isinstance(out2, tuple) and out2[0] is None and out2[1] is not None

    # Case 3: zero background -> None (implicit return in the PyTorch module).
    out3 = filter_none_speech(fg, jnp.zeros((C, S), jnp.float32))
    assert out3 is None

    # Ragged / non-power-of-two length also works via wrapper-side zero pad.
    mono = jax.random.normal(k1, (1, 16000), dtype=jnp.float32)
    e2 = jax.block_until_ready(sum_of_squares_pair(mono, mono))
    ref_mono = float(jnp.sum(mono * mono))
    assert jnp.allclose(e2, jnp.array([ref_mono, ref_mono]), rtol=1e-4)

    print("KERNEL_OK")
</pallas_src>

<mosaic_0001>
module attributes {stable_mosaic.version = 11 : i64} {
  func.func @_sumsq_pair_kernel(%arg0: i32, %arg1: i32, %arg2: memref<8x1024xf32, #tpu.memory_space<vmem>>, %arg3: memref<8x1024xf32, #tpu.memory_space<vmem>>, %arg4: memref<1x8x128xf32, #tpu.memory_space<vmem>>, %arg5: memref<8x1024xf32, #tpu.memory_space<vmem>>, %arg6: memref<8x1024xf32, #tpu.memory_space<vmem>>) attributes {dimension_semantics = [#tpu.dimension_semantics<parallel>, #tpu.dimension_semantics<arbitrary>], iteration_bounds = array<i64: 2, 1>, scalar_prefetch = 0 : i64, scratch_operands = 2 : i64, tpu.core_type = #tpu.core_type<tc>, window_params = [{transform_indices = @transform_0, window_bounds = array<i64: 8, 1024>}, {transform_indices = @transform_1, window_bounds = array<i64: 8, 1024>}, {transform_indices = @transform_2, window_bounds = array<i64: 1, 8, 128>}]} {
    %c0_i32 = arith.constant 0 : i32
    %0 = arith.cmpi eq, %arg1, %c0_i32 : i32
    %1 = arith.extui %0 : i1 to i32
    %c0_i32_0 = arith.constant 0 : i32
    %2 = arith.cmpi ne, %1, %c0_i32_0 : i32
    scf.if %2 {
      %cst = arith.constant 0.000000e+00 : f32
      %16 = vector.broadcast %cst : f32 to vector<8x1024xf32>
      %c0_14 = arith.constant 0 : index
      %c0_15 = arith.constant 0 : index
      %17 = vector.load %arg5[%c0_14, %c0_15] : memref<8x1024xf32, #tpu.memory_space<vmem>>, vector<8x1024xf32>
      tpu.vector_store %arg5[%c0_14, %c0_15], %16 {strides = array<i32>} : memref<8x1024xf32, #tpu.memory_space<vmem>>, vector<8x1024xf32>,
      %cst_16 = arith.constant 0.000000e+00 : f32
      %18 = vector.broadcast %cst_16 : f32 to vector<8x1024xf32>
      %c0_17 = arith.constant 0 : index
      %c0_18 = arith.constant 0 : index
      %19 = vector.load %arg6[%c0_17, %c0_18] : memref<8x1024xf32, #tpu.memory_space<vmem>>, vector<8x1024xf32>
      tpu.vector_store %arg6[%c0_17, %c0_18], %18 {strides = array<i32>} : memref<8x1024xf32, #tpu.memory_space<vmem>>, vector<8x1024xf32>,
    } else {
    }
    %c0 = arith.constant 0 : index
    %c0_1 = arith.constant 0 : index
    %3 = vector.load %arg2[%c0, %c0_1] : memref<8x1024xf32, #tpu.memory_space<vmem>>, vector<8x1024xf32>
    %c0_2 = arith.constant 0 : index
    %c0_3 = arith.constant 0 : index
    %4 = vector.load %arg3[%c0_2, %c0_3] : memref<8x1024xf32, #tpu.memory_space<vmem>>, vector<8x1024xf32>
    %c0_4 = arith.constant 0 : index
    %c0_5 = arith.constant 0 : index
    %5 = vector.load %arg5[%c0_4, %c0_5] : memref<8x1024xf32, #tpu.memory_space<vmem>>, vector<8x1024xf32>
    %6 = arith.mulf %3, %3 : vector<8x1024xf32>
    %7 = arith.addf %5, %6 : vector<8x1024xf32>
    %c0_6 = arith.constant 0 : index
    %c0_7 = arith.constant 0 : index
    %8 = vector.load %arg5[%c0_6, %c0_7] : memref<8x1024xf32, #tpu.memory_space<vmem>>, vector<8x1024xf32>
    tpu.vector_store %arg5[%c0_6, %c0_7], %7 {strides = array<i32>} : memref<8x1024xf32, #tpu.memory_space<vmem>>, vector<8x1024xf32>,
    %c0_8 = arith.constant 0 : index
    %c0_9 = arith.constant 0 : index
    %9 = vector.load %arg6[%c0_8, %c0_9] : memref<8x1024xf32, #tpu.memory_space<vmem>>, vector<8x1024xf32>
    %10 = arith.mulf %4, %4 : vector<8x1024xf32>
    %11 = arith.addf %9, %10 : vector<8x1024xf32>
    %c0_10 = arith.constant 0 : index
    %c0_11 = arith.constant 0 : index
    %12 = vector.load %arg6[%c0_10, %c0_11] : memref<8x1024xf32, #tpu.memory_space<vmem>>, vector<8x1024xf32>
    tpu.vector_store %arg6[%c0_10, %c0_11], %11 {strides = array<i32>} : memref<8x1024xf32, #tpu.memory_space<vmem>>, vector<8x1024xf32>,
    %c0_i32_12 = arith.constant 0 : i32
    %13 = arith.cmpi eq, %arg1, %c0_i32_12 : i32
    %14 = arith.extui %13 : i1 to i32
    %c0_i32_13 = arith.constant 0 : i32
    %15 = arith.cmpi ne, %14, %c0_i32_13 : i32
    scf.if %15 {
      %c0_14 = arith.constant 0 : index
      %c0_15 = arith.constant 0 : index
      %16 = vector.load %arg5[%c0_14, %c0_15] : memref<8x1024xf32, #tpu.memory_space<vmem>>, vector<8x1024xf32>
      %17 = vector.shape_cast %16 : vector<8x1024xf32> to vector<1x8x1024xf32>
      %cst = arith.constant dense<0.000000e+00> : vector<1xf32>
      %18 = vector.multi_reduction <add>, %17, %cst [1, 2] : vector<1x8x1024xf32> to vector<1xf32>
      %19 = vector.shape_cast %18 : vector<1xf32> to vector<1x1x1xf32>
      %20 = vector.extract %19[0, 0, 0] : f32 from vector<1x1x1xf32>
      %c0_16 = arith.constant 0 : index
      %c0_17 = arith.constant 0 : index
      %21 = vector.load %arg6[%c0_16, %c0_17] : memref<8x1024xf32, #tpu.memory_space<vmem>>, vector<8x1024xf32>
      %22 = vector.shape_cast %21 : vector<8x1024xf32> to vector<1x8x1024xf32>
      %cst_18 = arith.constant dense<0.000000e+00> : vector<1xf32>
      %23 = vector.multi_reduction <add>, %22, %cst_18 [1, 2] : vector<1x8x1024xf32> to vector<1xf32>
      %24 = vector.shape_cast %23 : vector<1xf32> to vector<1x1x1xf32>
      %25 = vector.extract %24[0, 0, 0] : f32 from vector<1x1x1xf32>
      %26 = tpu.iota {dimensions = array<i32: 1>} : vector<1x8x128xi32>
      %27 = tpu.iota {dimensions = array<i32: 2>} : vector<1x8x128xi32>
      %c0_i32_19 = arith.constant 0 : i32
      %28 = vector.broadcast %c0_i32_19 : i32 to vector<1x8x128xi32>
      %29 = arith.cmpi eq, %26, %28 : vector<1x8x128xi32>
      %c0_i32_20 = arith.constant 0 : i32
      %30 = vector.broadcast %c0_i32_20 : i32 to vector<1x8x128xi32>
      %31 = arith.cmpi eq, %27, %30 : vector<1x8x128xi32>
      %32 = arith.andi %29, %31 : vector<1x8x128xi1>
      %c1_i32 = arith.constant 1 : i32
      %33 = vector.broadcast %c1_i32 : i32 to vector<1x8x128xi32>
      %34 = arith.cmpi eq, %27, %33 : vector<1x8x128xi32>
      %35 = arith.andi %29, %34 : vector<1x8x128xi1>
      %cst_21 = arith.constant 0.000000e+00 : f32
      %36 = vector.broadcast %25 : f32 to vector<1x8x128xf32>
      %37 = vector.broadcast %cst_21 : f32 to vector<1x8x128xf32>
      %38 = arith.select %35, %36, %37 : vector<1x8x128xi1>, vector<1x8x128xf32>
      %39 = vector.broadcast %20 : f32 to vector<1x8x128xf32>
      %40 = arith.select %32, %39, %38 : vector<1x8x128xi1>, vector<1x8x128xf32>
      %c0_22 = arith.constant 0 : index
      %c0_23 = arith.constant 0 : index
      %c0_24 = arith.constant 0 : index
      %41 = vector.load %arg4[%c0_22, %c0_23, %c0_24] : memref<1x8x128xf32, #tpu.memory_space<vmem>>, vector<1x8x128xf32>
      tpu.vector_store %arg4[%c0_22, %c0_23, %c0_24], %40 {strides = array<i32>} : memref<1x8x128xf32, #tpu.memory_space<vmem>>, vector<1x8x128xf32>,
    } else {
    }
    return
  }
  func.func @transform_0(%arg0: i32, %arg1: i32) -> (i32, i32) {
    %c1_i32 = arith.constant 1 : i32
    %0 = arith.muli %arg0, %c1_i32 : i32
    %1 = arith.addi %0, %arg1 : i32
    %c0_i32 = arith.constant 0 : i32
    %c0_i32_0 = arith.constant 0 : i32
    return %1, %c0_i32 : i32, i32
  }
  func.func @transform_1(%arg0: i32, %arg1: i32) -> (i32, i32) {
    %c1_i32 = arith.constant 1 : i32
    %0 = arith.muli %arg0, %c1_i32 : i32
    %1 = arith.addi %0, %arg1 : i32
    %c0_i32 = arith.constant 0 : i32
    %c0_i32_0 = arith.constant 0 : i32
    return %1, %c0_i32 : i32, i32
  }
  func.func @transform_2(%arg0: i32, %arg1: i32) -> (i32, i32, i32) {
    %c0_i32 = arith.constant 0 : i32
    %c0_i32_0 = arith.constant 0 : i32
    %c0_i32_1 = arith.constant 0 : i32
    return %arg0, %c0_i32, %c0_i32_0 : i32, i32, i32
  }
}

</mosaic_0001>

<bundles_post_ra>
// kernel: sum_of_squares_pair.1
= control target key start
LH: loop header
LB: loop body
LE: loop exit
PB: predicated region body
PF: predicated region fallthrough
CT: control target
= control target key end

     0   :  { %s507_s9 = smov 0   ;;  %s509_s10 = smov 0   ;;  %s557_s0 = inlined_call_operand.vmem [shape: f32[16,1024], index: 0, kind: input, shape index: {}]   ;;  %s558_s1 = inlined_call_operand.vmem [shape: f32[16,1024], index: 1, kind: input, shape index: {}]   ;;  %s559_s2 = inlined_call_operand.vmem [shape: f32[2,8,128], index: 2, kind: output, shape index: {}]  }
   0x1   :  { %s511_s11 = smov 0  }
   0x2 LB: > { %s24_s12 = sadd.s32 1, %s486_s10  ;;  %p430_p0 = scmp.ge.s32.totalorder %s490_s11, 1  ;;  %s490_s11 = sphi %s511_s11, %s12_s11   ;;  %s486_s10 = sphi %s509_s10, %s561_s10   ;;  %s482_s9 = sphi %s507_s9, %s560_s9  }
   0x3   : > { %p26_p1 = scmp.ge.s32.totalorder %s24_s12, 2  ;;  %p142_p2 = scmp.lt.s32.totalorder %s490_s11, 3 }
   0x5   : > { %s563_s12 = smov (%p26_p1, %s24_s12), 0  ;;  %p143_p3 = pnand %p430_p0, %p142_p2 }
   0x6   : > { %p171_p4 = scmp.lt.s32.totalorder (!%p143_p3), %s482_s9, 1  ;;  %v339_v60 = vlaneseq (!%p143_p3) }
   0x7   : > { %146 = sbr.rel (%p143_p3) target bundleno = 246 (0xf6), region = 28 }
   0x8   : > { %v340_v61 = vshrl.u32 (!%p143_p3), %v339_v60, 7  ;;  %v342_v62 = vand.u32 (!%p143_p3), 127, %v339_v60 }
   0xa   : > { %vm343_vm0 = vcmp.eq.s32.totalorder (!%p143_p3), %v340_v61, 0  ;;  %vm346_vm1 = vcmp.eq.s32.totalorder (!%p143_p3), %v342_v62, 1  ;;  %vm344_vm2 = vcmp.eq.s32.totalorder (!%p143_p3), %v342_v62, 0 }
   0xb   : > { %vm347_vm3 = vmand (!%p143_p3), %vm343_vm0, %vm346_vm1 }
   0xc   : > { %vm345_vm4 = vmand (!%p143_p3), %vm343_vm0, %vm344_vm2 }
   0xe   : > { %s565_s9 = smov (!%p171_p4, %s482_s9), 1 }
   0xf   : > { %s438_s13 = sshll.u32 %s565_s9, 6  ;;  %s435_s20 = sshll.u32 %s565_s9, 3 }
  0x10   : > { %s175_s16 = scalar_lea.vmem %s557_s0, %s438_s13  ;;  %s534_s19 = scalar_lea.vmem %s558_s1, %s438_s13 }
  0x11   : > { %v208_v0 = vld [vmem:[%s175_s16] sm:$0xff]  ;;  %v209_v1 = vld [vmem:[%s175_s16 + $0x8] sm:$0xff]  ;;  %v210_v2 = vld [vmem:[%s175_s16 + $0x10] sm:$0xff]  ;;  %s187_s25 = scalar_lea.vmem %s559_s2, %s435_s20 }
  0x12   : > { %v211_v3 = vld [vmem:[%s175_s16 + $0x18] sm:$0xff]  ;;  %v232_v4 = vmul.f32 %v208_v0, %v208_v0  ;;  %v233_v5 = vmul.f32 %v209_v1, %v209_v1  ;;  %v234_v6 = vmul.f32 %v210_v2, %v210_v2  ;;  %v212_v7 = vld [vmem:[%s175_s16 + $0x20] sm:$0xff]  ;;  %v217_v11 = vld [vmem:[%s534_s19 + $0x8] sm:$0xff] }
  0x13   : > { %v216_v8 = vld [vmem:[%s534_s19] sm:$0xff]  ;;  %v235_v9 = vmul.f32 %v211_v3, %v211_v3  ;;  %v218_v12 = vld [vmem:[%s534_s19 + $0x10] sm:$0xff]  ;;  %v219_v13 = vld [vmem:[%s534_s19 + $0x18] sm:$0xff]  ;;  %v265_v16 = vmul.f32 %v217_v11, %v217_v11  ;;  %v236_v18 = vmul.f32 %v212_v7, %v212_v7 }
  0x14   : > { %v299_v10 = vadd.f32 %v233_v5, %v232_v4  ;;  %v264_v14 = vmul.f32 %v216_v8, %v216_v8  ;;  %v213_v15 = vld [vmem:[%s175_s16 + $0x28] sm:$0xff]  ;;  %v266_v17 = vmul.f32 %v218_v12, %v218_v12  ;;  %v220_v20 = vld [vmem:[%s534_s19 + $0x20] sm:$0xff]  ;;  %v214_v21 = vld [vmem:[%s175_s16 + $0x30] sm:$0xff]  ;;  %v267_v22 = vmul.f32 %v219_v13, %v219_v13 }
  0x15   : > { %v237_v24 = vmul.f32 %v213_v15, %v213_v15  ;;  %v221_v26 = vld [vmem:[%s534_s19 + $0x28] sm:$0xff]  ;;  %v215_v27 = vld [vmem:[%s175_s16 + $0x38] sm:$0xff]  ;;  %v268_v28 = vmul.f32 %v220_v20, %v220_v20  ;;  %v238_v30 = vmul.f32 %v214_v21, %v214_v21  ;;  %v222_v32 = vld [vmem:[%s534_s19 + $0x30] sm:$0xff] }
  0x16   : > { %v300_v19 = vadd.f32 %v299_v10, %v234_v6  ;;  %v323_v23 = vadd.f32 %v265_v16, %v264_v14  ;;  %v269_v33 = vmul.f32 %v221_v26, %v221_v26  ;;  %v239_v35 = vmul.f32 %v215_v27, %v215_v27  ;;  %v223_v37 = vld [vmem:[%s534_s19 + $0x38] sm:$0xff] }
  0x17   : > { %v270_v38 = vmul.f32 %v222_v32, %v222_v32  ;;  %v271_v41 = vmul.f32 %v223_v37, %v223_v37 }
  0x18   : > { %v301_v25 = vadd.f32 %v300_v19, %v235_v9  ;;  %v324_v29 = vadd.f32 %v323_v23, %v266_v17 }
  0x1a   : > { %v302_v31 = vadd.f32 %v301_v25, %v236_v18  ;;  %v325_v34 = vadd.f32 %v324_v29, %v267_v22 }
  0x1c   : > { %v303_v36 = vadd.f32 %v302_v31, %v237_v24  ;;  %v326_v39 = vadd.f32 %v325_v34, %v268_v28 }
  0x1e   : > { %v304_v40 = vadd.f32 %v303_v36, %v238_v30  ;;  %v327_v42 = vadd.f32 %v326_v39, %v269_v33 }
  0x20   : > { %v305_v43 = vadd.f32 %v304_v40, %v239_v35  ;;  %v328_v44 = vadd.f32 %v327_v42, %v270_v38 }
  0x22   : > { %306 = vadd.xlane.f32.xlu0 %v305_v43  ;;  %v329_v45 = vadd.f32 %v328_v44, %v271_v41 }
  0x26   : > { %330 = vadd.xlane.f32.xlu0 %v329_v45 }
  0xaf   : > { %v307_v46 = vpop.xlane.xlu0 %306 }
  0xb0   : > { %v308_v47 = vrot.slane %v307_v46, 4 }
  0xb2   : > { %v309_v48 = vadd.f32 %v308_v47, %v307_v46 }
  0xb3   : > { %v331_v49 = vpop.xlane.xlu0 %330 }
  0xb4   : > { %v310_v50 = vrot.slane %v309_v48, 2  ;;  %v332_v51 = vrot.slane %v331_v49, 4 }
  0xb6   : > { %v333_v52 = vadd.f32 %v332_v51, %v331_v49  ;;  %v311_v53 = vadd.f32 %v310_v50, %v309_v48 }
  0xb8   : > { %v334_v54 = vrot.slane %v333_v52, 2  ;;  %v312_v55 = vrot.slane %v311_v53, 1 }
  0xba   : > { %v335_v56 = vadd.f32 %v334_v54, %v333_v52  ;;  %v313_v57 = vadd.f32 %v312_v55, %v311_v53 }
  0xbc   : > { %440 = vpush %v313_v57  ;;  %v336_v58 = vrot.slane %v335_v56, 1 }
  0xbe   : > { %v337_v59 = vadd.f32 %v336_v58, %v335_v56 }
  0xc0   : > { %442 = vpush %v337_v59 }
  0xed   : > { %s441_s21 = spop %440 }
  0xee   : > { %v350_v0 = vstv %s441_s21 }
  0xf1   : > { %s443_s22 = spop %442 }
  0xf2   : > { %v348_v63 = vstv %s443_s22 }
  0xf3   : > { %v349_v1 = vsel %vm347_vm3, %v348_v63, 0.0 }
  0xf4   : > { %v351_v2 = vsel %vm345_vm4, %v350_v0, %v349_v1 }
  0xf5   : > { %352 = vst [vmem:[%s187_s25] sm:$0xff] %v351_v2 }
  0xf6 PF: > { %s12_s11 = sadd.s32 1, %s490_s11   ;;  %s560_s9 = smov %s486_s10 }
  0xf7   : > { %p9_p5 = scmp.ge.s32.totalorder %s12_s11, 4   ;;  %s561_s10 = smov %s563_s12 }
  0xf9   :  { %11 = sbr.rel (!%p9_p5) target bundleno = 2 (0x2), region = 69 }

</bundles_post_ra>
